<compile_context>
chip_gen: v5e
topology: v5e:2x2
jax: 0.10.0
libtpu: 0.0.40
codegen_flags: <defaults>
</compile_context>

<pallas_src>
import math

import jax
import jax.numpy as jnp
from jax.experimental import pallas as pl
from jax.experimental.pallas import tpu as pltpu


# ---------------------------------------------------------------------------
# PE table (init-time buffer, plain JAX — exactly matches the PyTorch buffer).
# ---------------------------------------------------------------------------
def make_sinusoidal_pe(d_model: int, max_len: int = 5000) -> jnp.ndarray:
    position = jnp.arange(0, max_len, dtype=jnp.float32)[:, None]          # (L, 1)
    div_term = jnp.exp(
        jnp.arange(0, d_model, 2, dtype=jnp.float32)
        * (-(math.log(10000.0) / d_model))
    )                                                                       # (D/2,)
    angles = position * div_term                                            # (L, D/2)
    pe = jnp.zeros((max_len, d_model), dtype=jnp.float32)
    pe = pe.at[:, 0::2].set(jnp.sin(angles))
    pe = pe.at[:, 1::2].set(jnp.cos(angles))
    return pe


# ---------------------------------------------------------------------------
# Kernels (pe kept f32; add done at f32, cast to the output dtype).
# ---------------------------------------------------------------------------
def _add_pe_tile_kernel(x_ref, pe_ref, o_ref):
    # Batch dim is squeezed away: x_ref / pe_ref / o_ref are (TS, Dv).
    o_ref[...] = (x_ref[...].astype(jnp.float32) + pe_ref[...]).astype(o_ref.dtype)


def _add_pe_whole_kernel(x_ref, pe_ref, o_ref):
    # Single-step path: x_ref / o_ref are (B, Sv, Dv); pe_ref is (Sv, Dv) f32.
    o_ref[...] = (
        x_ref[...].astype(jnp.float32) + pe_ref[...][None, :, :]
    ).astype(o_ref.dtype)


# ---------------------------------------------------------------------------
# Tiling heuristics.
# ---------------------------------------------------------------------------
_TARGET_BLOCK_BYTES = 4 * 1024 * 1024   # per x/out block (amortizes ~0.35us/step)
_VMEM_LIVE_BUDGET = 28 * 1024 * 1024    # 2x x + 2x out + 2x pe(f32) live buffers
_VMEM_LIMIT_BYTES = 32 * 1024 * 1024    # safe on v5e/v6e (128 MiB) and v7x (64 MiB/TC)
_SMALL_X_BYTES = 4 * 1024 * 1024        # whole problem in one block below this
_SMALL_PE_BYTES = 4 * 1024 * 1024


def _choose_seq_tile(Sv: int, Dv: int, x_dsize: int, batch: int) -> int:
    """Pick a seq-tile: byte-sized, VMEM-safe, multiple of 8 (or full Sv)."""
    per_row_block = Dv * x_dsize                 # one row of an x (or out) block
    per_row_live = Dv * (4 * x_dsize + 2 * 4)    # 2x x + 2x out + 2x pe (f32)

    ts = min(_TARGET_BLOCK_BYTES // per_row_block,
             _VMEM_LIVE_BUDGET // per_row_live)
    ts = max(8, (ts // 8) * 8)                   # multiple of 8 (sublane rule)
    if ts >= Sv:
        ts = Sv                                  # full dim -> always legal

    # Guarantee >= 2 total grid steps so both v7x TensorCores get work.
    if batch * pl.cdiv(Sv, ts) < 2 and Sv >= 16:
        ts = max(8, (((Sv + 1) // 2) // 8) * 8)

    # Prefer a TS that evenly divides Sv (full unmasked vst on every step),
    # but only if the divisor is not too much smaller than the byte target.
    if ts < Sv and Sv % ts != 0:
        for cand in range(ts, 7, -8):
            if Sv % cand == 0:
                if cand >= ts // 2:
                    ts = cand
                break
    return ts


# ---------------------------------------------------------------------------
# Wrapper.
# ---------------------------------------------------------------------------
def positional_encoding_forward(x: jnp.ndarray, pe: jnp.ndarray,
                                *, donate_x: bool = False) -> jnp.ndarray:
    """x: (B, S, D); pe: (max_len, D) float32. Returns x + pe[None, :S, :]."""
    B, S, D = x.shape
    if S > pe.shape[0]:
        raise ValueError(
            f"sequence length {S} exceeds PE table max_len {pe.shape[0]}")
    if pe.shape[-1] != D:
        raise ValueError(
            f"d_model mismatch: x has {D}, pe has {pe.shape[-1]}")

    x_dsize = jnp.dtype(x.dtype).itemsize
    pe_f32 = pe[:S, :].astype(jnp.float32)       # keep pe f32; add at f32 in-kernel

    # ---- lane-dense view ---------------------------------------------------
    pad = 0
    if D % 128 == 0:
        Sv, Dv = S, D
        xv, pev = x, pe_f32
    elif (S * D) % 128 == 0:
        # Fold trailing (S, D) into (S*D/128, 128): every store a full vst.
        Sv, Dv = (S * D) // 128, 128
        xv = x.reshape(B, Sv, Dv)
        pev = pe_f32.reshape(Sv, Dv)
    else:
        # Un-foldable: pad D up to the next multiple of 128 and slice on return.
        Dp = ((D + 127) // 128) * 128
        pad = Dp - D
        xv = jnp.pad(x, ((0, 0), (0, 0), (0, pad)))
        pev = jnp.pad(pe_f32, ((0, 0), (0, pad)))
        Sv, Dv = S, Dp

    cost = pl.CostEstimate(
        flops=B * Sv * Dv,
        transcendentals=0,
        bytes_accessed=2 * B * Sv * Dv * x_dsize + Sv * Dv * 4,
    )
    aliases = {0: 0} if donate_x else {}

    x_bytes = B * Sv * Dv * x_dsize
    pe_bytes = Sv * Dv * 4

    if x_bytes <= _SMALL_X_BYTES and pe_bytes <= _SMALL_PE_BYTES:
        # Small problem: one grid step, whole problem in a single block.
        out = pl.pallas_call(
            _add_pe_whole_kernel,
            out_shape=jax.ShapeDtypeStruct((B, Sv, Dv), x.dtype),
            grid=(1,),
            in_specs=[
                pl.BlockSpec((B, Sv, Dv), lambda i: (0, 0, 0)),
                pl.BlockSpec((Sv, Dv), lambda i: (0, 0)),
            ],
            out_specs=pl.BlockSpec((B, Sv, Dv), lambda i: (0, 0, 0)),
            compiler_params=pltpu.CompilerParams(
                dimension_semantics=("parallel",),
                vmem_limit_bytes=_VMEM_LIMIT_BYTES,
            ),
            cost_estimate=cost,
            input_output_aliases=aliases,
        )(xv, pev)
    else:
        # Tiled path: grid = (num_seq_tiles, B); batch innermost so pe's block
        # index is unchanged across B consecutive steps (stays in VMEM).
        TS = _choose_seq_tile(Sv, Dv, x_dsize, B)
        grid_s = pl.cdiv(Sv, TS)
        out = pl.pallas_call(
            _add_pe_tile_kernel,
            out_shape=jax.ShapeDtypeStruct((B, Sv, Dv), x.dtype),
            grid=(grid_s, B),
            in_specs=[
                pl.BlockSpec((None, TS, Dv), lambda s, b: (b, s, 0)),  # x, batch squeezed
                pl.BlockSpec((TS, Dv), lambda s, b: (s, 0)),           # pe, seq-tile only
            ],
            out_specs=pl.BlockSpec((None, TS, Dv), lambda s, b: (b, s, 0)),
            compiler_params=pltpu.CompilerParams(
                dimension_semantics=("parallel", "parallel"),
                vmem_limit_bytes=_VMEM_LIMIT_BYTES,
            ),
            cost_estimate=cost,
            input_output_aliases=aliases,
        )(xv, pev)

    if pad:
        return out[:, :, :D]
    return out.reshape(B, S, D)


# ---------------------------------------------------------------------------
# Demo / correctness checks.
# ---------------------------------------------------------------------------
if __name__ == "__main__":
    def ref_forward(x, pe):
        S = x.shape[1]
        return (x.astype(jnp.float32) + pe[None, :S, :].astype(jnp.float32)
                ).astype(x.dtype)

    # 1) Small shapes consistent with the module's forward: (batch, seq, d_model).
    B, S, D = 2, 8, 32
    pe = make_sinusoidal_pe(D, max_len=64)
    x = jax.random.normal(jax.random.PRNGKey(0), (B, S, D), dtype=jnp.float32)
    out = jax.block_until_ready(positional_encoding_forward(x, pe))
    assert out.shape == (B, S, D)
    assert jnp.allclose(out, ref_forward(x, pe), atol=1e-6), "mismatch (small path)"

    # 2) Tiled path with multi-MiB blocks (D multiple of 128, no fold).
    B2, S2, D2 = 2, 4096, 256
    pe2 = make_sinusoidal_pe(D2, max_len=4096)
    x2 = jax.random.normal(jax.random.PRNGKey(0), (B2, S2, D2), dtype=jnp.float32)
    out2 = jax.block_until_ready(positional_encoding_forward(x2, pe2))
    assert jnp.allclose(out2, ref_forward(x2, pe2), atol=1e-6), "mismatch (tiled path)"

    # 3) Ragged last seq tile (Sv not divisible by TS), batch=1 -> 2 seq tiles.
    B3, S3, D3 = 1, 9000, 128
    pe3 = make_sinusoidal_pe(D3, max_len=9216)
    x3 = jax.random.normal(jax.random.PRNGKey(0), (B3, S3, D3), dtype=jnp.float32)
    out3 = jax.block_until_ready(positional_encoding_forward(x3, pe3))
    assert jnp.allclose(out3, ref_forward(x3, pe3), atol=1e-6), "mismatch (ragged tile)"

    # 4) Un-foldable small D (pad-to-128 path) with short, non-multiple-of-8 S.
    B4, S4, D4 = 2, 7, 48
    pe4 = make_sinusoidal_pe(D4, max_len=16)
    x4 = jax.random.normal(jax.random.PRNGKey(0), (B4, S4, D4), dtype=jnp.float32)
    out4 = jax.block_until_ready(positional_encoding_forward(x4, pe4))
    assert jnp.allclose(out4, ref_forward(x4, pe4), atol=1e-6), "mismatch (pad path)"

    # 5) bf16 activations: add done at f32 in-kernel (matches fp32-buffer numerics).
    B5, S5, D5 = 2, 64, 64
    pe5 = make_sinusoidal_pe(D5, max_len=128)
    x5 = jax.random.normal(jax.random.PRNGKey(0), (B5, S5, D5), dtype=jnp.bfloat16)
    out5 = jax.block_until_ready(positional_encoding_forward(x5, pe5))
    ref5 = ref_forward(x5, pe5)
    assert jnp.allclose(out5.astype(jnp.float32), ref5.astype(jnp.float32),
                        atol=1e-2), "mismatch (bf16)"

    print("KERNEL_OK")
</pallas_src>

<mosaic_0001>
module attributes {stable_mosaic.version = 11 : i64} {
  func.func @_add_pe_whole_kernel(%arg0: i32, %arg1: memref<2x2x128xf32, #tpu.memory_space<vmem>>, %arg2: memref<2x128xf32, #tpu.memory_space<vmem>>, %arg3: memref<2x2x128xf32, #tpu.memory_space<vmem>>) attributes {dimension_semantics = [#tpu.dimension_semantics<parallel>], iteration_bounds = array<i64: 1>, scalar_prefetch = 0 : i64, scratch_operands = 0 : i64, tpu.core_type = #tpu.core_type<tc>, window_params = [{pipeline_mode = #tpu.pipeline_mode<synchronous>, transform_indices = @transform_0, window_bounds = array<i64: 2, 2, 128>}, {pipeline_mode = #tpu.pipeline_mode<synchronous>, transform_indices = @transform_1, window_bounds = array<i64: 2, 128>}, {pipeline_mode = #tpu.pipeline_mode<synchronous>, transform_indices = @transform_2, window_bounds = array<i64: 2, 2, 128>}]} {
    %c0 = arith.constant 0 : index
    %c0_0 = arith.constant 0 : index
    %c0_1 = arith.constant 0 : index
    %0 = vector.load %arg1[%c0, %c0_0, %c0_1] : memref<2x2x128xf32, #tpu.memory_space<vmem>>, vector<2x2x128xf32>
    %c0_2 = arith.constant 0 : index
    %c0_3 = arith.constant 0 : index
    %1 = vector.load %arg2[%c0_2, %c0_3] : memref<2x128xf32, #tpu.memory_space<vmem>>, vector<2x128xf32>
    %2 = vector.shape_cast %1 : vector<2x128xf32> to vector<1x2x128xf32>
    %3 = vector.broadcast %2 : vector<1x2x128xf32> to vector<2x2x128xf32>
    %4 = arith.addf %0, %3 : vector<2x2x128xf32>
    %c0_4 = arith.constant 0 : index
    %c0_5 = arith.constant 0 : index
    %c0_6 = arith.constant 0 : index
    %5 = vector.load %arg3[%c0_4, %c0_5, %c0_6] : memref<2x2x128xf32, #tpu.memory_space<vmem>>, vector<2x2x128xf32>
    tpu.vector_store %arg3[%c0_4, %c0_5, %c0_6], %4 {strides = array<i32>} : memref<2x2x128xf32, #tpu.memory_space<vmem>>, vector<2x2x128xf32>,
    return
  }
  func.func @transform_0(%arg0: i32) -> (i32, i32, i32) {
    %c0_i32 = arith.constant 0 : i32
    %c0_i32_0 = arith.constant 0 : i32
    %c0_i32_1 = arith.constant 0 : i32
    %c0_i32_2 = arith.constant 0 : i32
    return %c0_i32, %c0_i32_0, %c0_i32_1 : i32, i32, i32
  }
  func.func @transform_1(%arg0: i32) -> (i32, i32) {
    %c0_i32 = arith.constant 0 : i32
    %c0_i32_0 = arith.constant 0 : i32
    %c0_i32_1 = arith.constant 0 : i32
    return %c0_i32, %c0_i32_0 : i32, i32
  }
  func.func @transform_2(%arg0: i32) -> (i32, i32, i32) {
    %c0_i32 = arith.constant 0 : i32
    %c0_i32_0 = arith.constant 0 : i32
    %c0_i32_1 = arith.constant 0 : i32
    %c0_i32_2 = arith.constant 0 : i32
    return %c0_i32, %c0_i32_0, %c0_i32_1 : i32, i32, i32
  }
}

</mosaic_0001>

<bundles_post_ra>
// kernel: tpu_custom_call.1
= control target key start
LH: loop header
LB: loop body
LE: loop exit
PB: predicated region body
PF: predicated region fallthrough
CT: control target
= control target key end

     0   :  { %7 = vsyncpa [#allocation3], 0  ;;  %s181_s0 = inlined_call_operand.hbm [shape: f32[2,2,128], index: 0, kind: input, shape index: {}]   ;;  %s182_s1 = inlined_call_operand.hbm [shape: f32[2,128], index: 1, kind: input, shape index: {}]   ;;  %s183_s2 = inlined_call_operand.hbm [shape: f32[2,2,128], index: 2, kind: output, shape index: {}]  }
   0x1   :  { %8 = vsyncpa [#allocation6], 0 }
   0x2   :  { %9 = vsyncpa [#allocation4], 0  ;;  %s14_s11 = sshll.u32 %s181_s0, 4  ;;  %s152_s12 = smov [#allocation2]   ;;  %s15_s11 = int_to_ptr.hbm [resolvable:$true] %s14_s11 }
   0x3   :  { %s16_s13 = sshll.u32 %s152_s12, 4  ;;  %s28_s16 = sshll.u32 %s182_s1, 4  ;;  %s17_s13 = int_to_ptr.vmem [resolvable:$true] %s16_s13  ;;  %s29_s16 = int_to_ptr.hbm [resolvable:$true] %s28_s16 }
   0x4   :  { %s153_s17 = smov 32   ;;  %s154_s18 = smov 2  }
   0x5   :  { %22 = dma.hbm_to_vmem [thread:$0]  %s15_s11, 64, %s17_s13, [#allocation3], %s153_s17, %s153_s17, %s154_s18  }
   0x6   :  { %s155_s19 = smov [#allocation5]  }
   0x7   :  { %s30_s20 = sshll.u32 %s155_s19, 4  ;;  %s31_s20 = int_to_ptr.vmem [resolvable:$true] %s30_s20 }
   0x8   :  { %33 = dma.hbm_to_vmem [thread:$0]  %s29_s16, 32, %s31_s20, [#allocation6]  }
   0x9   :  { %146 = dma.done.wait [#allocation3], 64  }
   0xa   :  { %147 = vsyncadd [#allocation3], 4294967232 }
   0xb   :  { %148 = dma.done.wait [#allocation6], 32  }
   0xc   :  { %149 = vsyncadd [#allocation6], 4294967264  ;;  %s156_s0 = smov [#allocation7]   ;;  %s55_s24 = sshll.u32 %s183_s2, 4  ;;  %v42_v0 = vld [vmem:[#allocation2] sm:$0x3]  ;;  %s56_s24 = int_to_ptr.hbm [resolvable:$true] %s55_s24 }
   0xd   :  { %s53_s21 = sshll.u32 %s156_s0, 4  ;;  %v44_v1 = vld [vmem:[#allocation5] sm:$0x3]  ;;  %v43_v2 = vld [vmem:[#allocation2 + $0x2] sm:$0x3]  ;;  %s54_s21 = int_to_ptr.vmem [resolvable:$true] %s53_s21 }
   0xe   :  { %v45_v3 = vadd.f32 %v44_v1, %v42_v0  ;;  %v46_v4 = vadd.f32 %v44_v1, %v43_v2 }
  0x10   :  { %47 = vst [vmem:[#allocation7] sm:$0x3] %v45_v3 }
  0x11   :  { %48 = vst [vmem:[#allocation7 + $0x2] sm:$0x3] %v46_v4 }
  0x12   :  { %61 = dma.vmem_to_hbm [thread:$0]  %s54_s21, 64, %s56_s24, [#allocation4], %s153_s17, %s153_s17, %s154_s18  }
  0x13   :  { %150 = dma.done.wait [#allocation4], 64  }
  0x14   :  { %151 = vsyncadd [#allocation4], 4294967232 }
  0x15   :  { %66 = vsyncpa [#allocation3], 1 }
  0x16   :  { %67 = vsyncpa [#allocation6], 1 }
  0x17   :  { %68 = vsyncpa [#allocation4], 1 }

</bundles_post_ra>
